<compile_context>
chip_gen: v6e
topology: v6e:2x2x1
jax: 0.10.0
libtpu: 0.0.40
codegen_flags: <defaults>
</compile_context>

<pallas_src>
import functools

import jax
import jax.numpy as jnp
from jax.experimental import pallas as pl
from jax.experimental.pallas import tpu as pltpu


def _cdiv(a, b):
    return -(-a // b)


def _round_up(x, m):
    return _cdiv(x, m) * m


def _row_tiling(m, tm_max, min_steps=2):
    """Tight row tiling: >= min_steps grid steps (v7x), < 8*steps padded rows."""
    steps = max(min_steps, _cdiv(m, tm_max))
    tm = _round_up(_cdiv(m, steps), 8)
    return tm * steps, tm, steps


# ----------------- fused conv GEMM + bias + ReLU + 2x2 max-pool ----------------- #

def _conv_gemm_relu_pool_kernel(p_ref, w_ref, b_ref, o_ref, *, n_pairs, owp):
    """One image per grid step.

    p_ref: (n_pairs, 4*owp, KKC) bf16 — per output-row pair, the 4 pool groups
           (row0/even-col, row0/odd-col, row1/even-col, row1/odd-col), owp rows each.
    w_ref: (KKC, Cout) bf16, resident.    b_ref: (1, Cout) f32, resident.
    o_ref: (n_pairs, owp, Cout) bf16 — pooled output rows only.
    """
    w = w_ref[...]          # already bf16: no per-step convert of resident weights
    b = b_ref[...]          # f32 bias folded into the f32 accumulator

    def body(i, carry):
        y = jnp.dot(p_ref[i], w, preferred_element_type=jnp.float32) + b
        y = jnp.maximum(y, 0.0)                                      # ReLU
        pooled = jnp.maximum(                                        # 2x2 max-pool
            jnp.maximum(y[0 * owp:1 * owp], y[1 * owp:2 * owp]),
            jnp.maximum(y[2 * owp:3 * owp], y[3 * owp:4 * owp]))
        o_ref[i] = pooled.astype(o_ref.dtype)
        return carry

    jax.lax.fori_loop(0, n_pairs, body, 0)


def conv_relu_pool(x_nhwc, w, b, *, pad):
    """Conv2d(k=5, stride 1, `pad`) + ReLU + MaxPool2d(2, 2) on NHWC activations.

    x_nhwc: (B, H, W, Cin); w: (Cout, Cin, k, k) (PyTorch layout); b: (Cout,).
    Returns (B, OH//2, OW//2, Cout) bf16 (floor-mode pool, matching PyTorch).
    """
    B = x_nhwc.shape[0]
    Cout, Cin, k, _ = w.shape
    x = x_nhwc.astype(jnp.bfloat16)
    if pad:
        x = jnp.pad(x, ((0, 0), (pad, pad), (pad, pad), (0, 0)))
    Hp, Wp = x.shape[1], x.shape[2]
    OH, OW = Hp - k + 1, Wp - k + 1
    OHP, OWP = OH // 2, OW // 2          # floor-mode pooled extents
    OHc, OWc = 2 * OHP, 2 * OWP          # conv rows/cols that survive the pool
    KKC = k * k * Cin

    # bf16 im2col in XLA, pool-surviving rows/cols only, reordered so each
    # (image, row-pair) block holds its 4 pool groups as contiguous row blocks.
    # TODO(synk): fuse patch extraction into the kernel (halo'd blocks / manual DMA).
    slabs = [x[:, di:di + OHc, dj:dj + OWc, :]
             for di in range(k) for dj in range(k)]
    patches = jnp.concatenate(slabs, axis=-1)                  # (B, OHc, OWc, KKC)
    patches = patches.reshape(B, OHP, 2, OWP, 2, KKC)
    patches = patches.transpose(0, 1, 2, 4, 3, 5).reshape(B, OHP, 4 * OWP, KKC)

    # Weights/bias prepared once outside the kernel (review: pre-cast to bf16).
    w2 = jnp.transpose(w, (2, 3, 1, 0)).reshape(KKC, Cout).astype(jnp.bfloat16)
    b2 = b.reshape(1, Cout).astype(jnp.float32)

    kern = functools.partial(_conv_gemm_relu_pool_kernel, n_pairs=OHP, owp=OWP)
    cost = pl.CostEstimate(
        flops=2 * B * OHP * 4 * OWP * KKC * Cout,
        transcendentals=0,
        bytes_accessed=2 * (B * OHP * 4 * OWP * KKC + KKC * Cout
                            + B * OHP * OWP * Cout) + 4 * Cout,
    )
    return pl.pallas_call(
        kern,
        out_shape=jax.ShapeDtypeStruct((B, OHP, OWP, Cout), jnp.bfloat16),
        grid=(B,),                                   # one image per step; >=2 at B>=2
        in_specs=[
            pl.BlockSpec((None, OHP, 4 * OWP, KKC), lambda bi: (bi, 0, 0, 0)),
            pl.BlockSpec((KKC, Cout), lambda bi: (0, 0)),   # resident, DMA'd once
            pl.BlockSpec((1, Cout), lambda bi: (0, 0)),     # resident, DMA'd once
        ],
        out_specs=pl.BlockSpec((None, OHP, OWP, Cout), lambda bi: (bi, 0, 0, 0)),
        compiler_params=pltpu.CompilerParams(dimension_semantics=("parallel",)),
        cost_estimate=cost,
    )(patches, w2, b2)


# --------------------------- fused MLP head kernel ------------------------------ #

def _mlp_head_kernel(x_ref, w6_ref, b6_ref, w8_ref, b8_ref, w10_ref, b10_ref, o_ref):
    h = jnp.dot(x_ref[...], w6_ref[...],
                preferred_element_type=jnp.float32) + b6_ref[...]
    h = jnp.maximum(h, 0.0).astype(jnp.bfloat16)          # fc6 + relu7
    h = jnp.dot(h, w8_ref[...],
                preferred_element_type=jnp.float32) + b8_ref[...]
    h = jnp.maximum(h, 0.0).astype(jnp.bfloat16)          # fc8 + relu9
    o_ref[...] = (jnp.dot(h, w10_ref[...],
                          preferred_element_type=jnp.float32) + b10_ref[...])


def mlp_head(x, w6, b6, w8, b8, w10, b10, *, tm_max=1024):
    """Fused fc6->ReLU->fc8->ReLU->fc10.  x:(M,400) bf16, w*: (K_in, N_out) f32."""
    M, K = x.shape
    H6, H8, NO = w6.shape[1], w8.shape[1], w10.shape[1]
    Mp, TM, steps = _row_tiling(M, tm_max)
    if Mp != M:
        x = jnp.pad(x, ((0, Mp - M), (0, 0)))
    w6b = w6.astype(jnp.bfloat16)
    w8b = w8.astype(jnp.bfloat16)
    w10b = w10.astype(jnp.bfloat16)
    b6f = b6.reshape(1, H6).astype(jnp.float32)
    b8f = b8.reshape(1, H8).astype(jnp.float32)
    b10f = b10.reshape(1, NO).astype(jnp.float32)
    cost = pl.CostEstimate(
        flops=2 * Mp * (K * H6 + H6 * H8 + H8 * NO),
        transcendentals=0,
        bytes_accessed=2 * (Mp * K + K * H6 + H6 * H8 + H8 * NO) + 4 * Mp * NO,
    )
    out = pl.pallas_call(
        _mlp_head_kernel,
        out_shape=jax.ShapeDtypeStruct((Mp, NO), jnp.float32),
        grid=(steps,),
        in_specs=[
            pl.BlockSpec((TM, K), lambda i: (i, 0)),
            pl.BlockSpec((K, H6), lambda i: (0, 0)),
            pl.BlockSpec((1, H6), lambda i: (0, 0)),
            pl.BlockSpec((H6, H8), lambda i: (0, 0)),
            pl.BlockSpec((1, H8), lambda i: (0, 0)),
            pl.BlockSpec((H8, NO), lambda i: (0, 0)),
            pl.BlockSpec((1, NO), lambda i: (0, 0)),
        ],
        out_specs=pl.BlockSpec((TM, NO), lambda i: (i, 0)),
        compiler_params=pltpu.CompilerParams(dimension_semantics=("parallel",)),
        cost_estimate=cost,
    )(x, w6b, b6f, w8b, b8f, w10b, b10f)
    return out[:M]


# --------------------------------- LetNet model --------------------------------- #

def init_params(key):
    """Deterministic init mimicking PyTorch's default U(-1/sqrt(fan_in), ...)."""

    def lin(k, fan_out, fan_in):
        k1, k2 = jax.random.split(k)
        bound = 1.0 / jnp.sqrt(jnp.float32(fan_in))
        w = jax.random.uniform(k1, (fan_out, fan_in), jnp.float32, -bound, bound)
        b = jax.random.uniform(k2, (fan_out,), jnp.float32, -bound, bound)
        return w, b

    ks = jax.random.split(key, 5)
    c0w, c0b = lin(ks[0], 6, 3 * 5 * 5)
    c3w, c3b = lin(ks[1], 16, 6 * 5 * 5)
    f6w, f6b = lin(ks[2], 120, 16 * 5 * 5)
    f8w, f8b = lin(ks[3], 84, 120)
    f10w, f10b = lin(ks[4], 10, 84)
    return (
        c0w.reshape(6, 3, 5, 5), c0b,
        c3w.reshape(16, 6, 5, 5), c3b,
        f6w, f6b, f8w, f8b, f10w, f10b,
    )


def letnet_forward(params, x):
    (c0w, c0b, c3w, c3b, f6w, f6b, f8w, f8b, f10w, f10b) = params
    # Single layout change at the model boundary: NCHW -> NHWC.
    x = jnp.transpose(x, (0, 2, 3, 1))                   # (B, 32, 32, 3)
    x = conv_relu_pool(x, c0w, c0b, pad=1)               # (B, 15, 15, 6) bf16
    x = conv_relu_pool(x, c3w, c3b, pad=0)               # (B, 5, 5, 16) bf16
    B = x.shape[0]
    feats = x.reshape(B, -1)                             # (B, 400), HWC order
    # PyTorch fc6 expects an NCHW (C,H,W) flatten; permute its weight columns
    # once (tiny, outside the kernels) instead of transposing the activation.
    f6w_hwc = f6w.reshape(120, 16, 5, 5).transpose(0, 2, 3, 1).reshape(120, 400)
    return mlp_head(feats, f6w_hwc.T, f6b, f8w.T, f8b, f10w.T, f10b)   # (B, 10) f32


if __name__ == "__main__":
    key = jax.random.PRNGKey(0)
    pkey, xkey = jax.random.split(key)
    params = init_params(pkey)
    # fc6 expects 16*5*5 flattened features => input spatial must be 32x32.
    x = jax.random.normal(xkey, (2, 3, 32, 32), jnp.float32)
    out = jax.jit(letnet_forward)(params, x)
    jax.block_until_ready(out)
    assert out.shape == (2, 10) and out.dtype == jnp.float32
    print("KERNEL_OK")
</pallas_src>

<mosaic_0001>
module attributes {stable_mosaic.version = 11 : i64} {
  func.func @_conv_gemm_relu_pool_kernel(%arg0: i32, %arg1: memref<1x15x60x75xbf16, #tpu.memory_space<vmem>>, %arg2: memref<75x6xbf16, #tpu.memory_space<vmem>>, %arg3: memref<1x6xf32, #tpu.memory_space<vmem>>, %arg4: memref<1x15x15x6xbf16, #tpu.memory_space<vmem>>) attributes {dimension_semantics = [#tpu.dimension_semantics<parallel>], iteration_bounds = array<i64: 2>, scalar_prefetch = 0 : i64, scratch_operands = 0 : i64, tpu.core_type = #tpu.core_type<tc>, window_params = [{transform_indices = @transform_0, window_bounds = array<i64: 1, 15, 60, 75>}, {pipeline_mode = #tpu.pipeline_mode<synchronous>, transform_indices = @transform_1, window_bounds = array<i64: 75, 6>}, {pipeline_mode = #tpu.pipeline_mode<synchronous>, transform_indices = @transform_2, window_bounds = array<i64: 1, 6>}, {transform_indices = @transform_3, window_bounds = array<i64: 1, 15, 15, 6>}]} {
    %c0 = arith.constant 0 : index
    %c0_0 = arith.constant 0 : index
    %0 = vector.load %arg2[%c0, %c0_0] : memref<75x6xbf16, #tpu.memory_space<vmem>>, vector<75x6xbf16>
    %c0_1 = arith.constant 0 : index
    %c0_2 = arith.constant 0 : index
    %1 = vector.load %arg3[%c0_1, %c0_2] : memref<1x6xf32, #tpu.memory_space<vmem>>, vector<1x6xf32>
    %c0_i32 = arith.constant 0 : i32
    %c15_i32 = arith.constant 15 : i32
    %2 = arith.addi %c0_i32, %c15_i32 : i32
    %c1_i32 = arith.constant 1 : i32
    scf.for %arg5 = %c0_i32 to %2 step %c1_i32  : i32 {
      %c0_4 = arith.constant 0 : index
      %3 = arith.index_cast %arg5 : i32 to index
      %c0_5 = arith.constant 0 : index
      %c0_6 = arith.constant 0 : index
      %4 = vector.load %arg1[%c0_4, %3, %c0_5, %c0_6] : memref<1x15x60x75xbf16, #tpu.memory_space<vmem>>, vector<1x1x60x75xbf16>
      %5 = vector.shape_cast %4 : vector<1x1x60x75xbf16> to vector<60x75xbf16>
      %cst = arith.constant dense<0.000000e+00> : vector<60x6xf32>
      %6 = tpu.matmul %5, %0, %cst {dimension_numbers = #tpu.dot_dimension_numbers<[1], [0], [0], [1], [0, 0, 1, 1], [], []>} : vector<60x75xbf16>, vector<75x6xbf16>, vector<60x6xf32> -> vector<60x6xf32>
      %7 = vector.broadcast %1 : vector<1x6xf32> to vector<60x6xf32>
      %8 = arith.addf %6, %7 : vector<60x6xf32>
      %cst_7 = arith.constant 0.000000e+00 : f32
      %9 = vector.broadcast %cst_7 : f32 to vector<60x6xf32>
      %10 = arith.maximumf %8, %9 : vector<60x6xf32>
      %11 = vector.extract_strided_slice %10 {offsets = [0, 0], sizes = [15, 6], strides = [1, 1]} : vector<60x6xf32> to vector<15x6xf32>
      %12 = vector.extract_strided_slice %10 {offsets = [15, 0], sizes = [15, 6], strides = [1, 1]} : vector<60x6xf32> to vector<15x6xf32>
      %13 = arith.maximumf %11, %12 : vector<15x6xf32>
      %14 = vector.extract_strided_slice %10 {offsets = [30, 0], sizes = [15, 6], strides = [1, 1]} : vector<60x6xf32> to vector<15x6xf32>
      %15 = vector.extract_strided_slice %10 {offsets = [45, 0], sizes = [15, 6], strides = [1, 1]} : vector<60x6xf32> to vector<15x6xf32>
      %16 = arith.maximumf %14, %15 : vector<15x6xf32>
      %17 = arith.maximumf %13, %16 : vector<15x6xf32>
      %18 = arith.truncf %17 : vector<15x6xf32> to vector<15x6xbf16>
      %c0_8 = arith.constant 0 : index
      %19 = arith.index_cast %arg5 : i32 to index
      %c0_9 = arith.constant 0 : index
      %c0_10 = arith.constant 0 : index
      %20 = vector.load %arg4[%c0_8, %19, %c0_9, %c0_10] : memref<1x15x15x6xbf16, #tpu.memory_space<vmem>>, vector<1x1x15x6xbf16>
      %21 = vector.shape_cast %20 : vector<1x1x15x6xbf16> to vector<15x6xbf16>
      %22 = vector.shape_cast %18 : vector<15x6xbf16> to vector<1x1x15x6xbf16>
      tpu.vector_store %arg4[%c0_8, %19, %c0_9, %c0_10], %22 {strides = array<i32>} : memref<1x15x15x6xbf16, #tpu.memory_space<vmem>>, vector<1x1x15x6xbf16>,
    }
    %c15_i32_3 = arith.constant 15 : i32
    return
  }
  func.func @transform_0(%arg0: i32) -> (i32, i32, i32, i32) {
    %c0_i32 = arith.constant 0 : i32
    %c0_i32_0 = arith.constant 0 : i32
    %c0_i32_1 = arith.constant 0 : i32
    %c0_i32_2 = arith.constant 0 : i32
    return %arg0, %c0_i32, %c0_i32_0, %c0_i32_1 : i32, i32, i32, i32
  }
  func.func @transform_1(%arg0: i32) -> (i32, i32) {
    %c0_i32 = arith.constant 0 : i32
    %c0_i32_0 = arith.constant 0 : i32
    %c0_i32_1 = arith.constant 0 : i32
    return %c0_i32, %c0_i32_0 : i32, i32
  }
  func.func @transform_2(%arg0: i32) -> (i32, i32) {
    %c0_i32 = arith.constant 0 : i32
    %c0_i32_0 = arith.constant 0 : i32
    %c0_i32_1 = arith.constant 0 : i32
    return %c0_i32, %c0_i32_0 : i32, i32
  }
  func.func @transform_3(%arg0: i32) -> (i32, i32, i32, i32) {
    %c0_i32 = arith.constant 0 : i32
    %c0_i32_0 = arith.constant 0 : i32
    %c0_i32_1 = arith.constant 0 : i32
    %c0_i32_2 = arith.constant 0 : i32
    return %arg0, %c0_i32, %c0_i32_0, %c0_i32_1 : i32, i32, i32, i32
  }
}

module attributes {stable_mosaic.version = 11 : i64} {
  func.func @_conv_gemm_relu_pool_kernel(%arg0: i32, %arg1: memref<1x5x20x150xbf16, #tpu.memory_space<vmem>>, %arg2: memref<150x16xbf16, #tpu.memory_space<vmem>>, %arg3: memref<1x16xf32, #tpu.memory_space<vmem>>, %arg4: memref<1x5x5x16xbf16, #tpu.memory_space<vmem>>) attributes {dimension_semantics = [#tpu.dimension_semantics<parallel>], iteration_bounds = array<i64: 2>, scalar_prefetch = 0 : i64, scratch_operands = 0 : i64, tpu.core_type = #tpu.core_type<tc>, window_params = [{transform_indices = @transform_0, window_bounds = array<i64: 1, 5, 20, 150>}, {pipeline_mode = #tpu.pipeline_mode<synchronous>, transform_indices = @transform_1, window_bounds = array<i64: 150, 16>}, {pipeline_mode = #tpu.pipeline_mode<synchronous>, transform_indices = @transform_2, window_bounds = array<i64: 1, 16>}, {transform_indices = @transform_3, window_bounds = array<i64: 1, 5, 5, 16>}]} {
    %c0 = arith.constant 0 : index
    %c0_0 = arith.constant 0 : index
    %0 = vector.load %arg2[%c0, %c0_0] : memref<150x16xbf16, #tpu.memory_space<vmem>>, vector<150x16xbf16>
    %c0_1 = arith.constant 0 : index
    %c0_2 = arith.constant 0 : index
    %1 = vector.load %arg3[%c0_1, %c0_2] : memref<1x16xf32, #tpu.memory_space<vmem>>, vector<1x16xf32>
    %c0_i32 = arith.constant 0 : i32
    %c5_i32 = arith.constant 5 : i32
    %2 = arith.addi %c0_i32, %c5_i32 : i32
    %c1_i32 = arith.constant 1 : i32
    scf.for %arg5 = %c0_i32 to %2 step %c1_i32  : i32 {
      %c0_4 = arith.constant 0 : index
      %3 = arith.index_cast %arg5 : i32 to index
      %c0_5 = arith.constant 0 : index
      %c0_6 = arith.constant 0 : index
      %4 = vector.load %arg1[%c0_4, %3, %c0_5, %c0_6] : memref<1x5x20x150xbf16, #tpu.memory_space<vmem>>, vector<1x1x20x150xbf16>
      %5 = vector.shape_cast %4 : vector<1x1x20x150xbf16> to vector<20x150xbf16>
      %cst = arith.constant dense<0.000000e+00> : vector<20x16xf32>
      %6 = tpu.matmul %5, %0, %cst {dimension_numbers = #tpu.dot_dimension_numbers<[1], [0], [0], [1], [0, 0, 1, 1], [], []>} : vector<20x150xbf16>, vector<150x16xbf16>, vector<20x16xf32> -> vector<20x16xf32>
      %7 = vector.broadcast %1 : vector<1x16xf32> to vector<20x16xf32>
      %8 = arith.addf %6, %7 : vector<20x16xf32>
      %cst_7 = arith.constant 0.000000e+00 : f32
      %9 = vector.broadcast %cst_7 : f32 to vector<20x16xf32>
      %10 = arith.maximumf %8, %9 : vector<20x16xf32>
      %11 = vector.extract_strided_slice %10 {offsets = [0, 0], sizes = [5, 16], strides = [1, 1]} : vector<20x16xf32> to vector<5x16xf32>
      %12 = vector.extract_strided_slice %10 {offsets = [5, 0], sizes = [5, 16], strides = [1, 1]} : vector<20x16xf32> to vector<5x16xf32>
      %13 = arith.maximumf %11, %12 : vector<5x16xf32>
      %14 = vector.extract_strided_slice %10 {offsets = [10, 0], sizes = [5, 16], strides = [1, 1]} : vector<20x16xf32> to vector<5x16xf32>
      %15 = vector.extract_strided_slice %10 {offsets = [15, 0], sizes = [5, 16], strides = [1, 1]} : vector<20x16xf32> to vector<5x16xf32>
      %16 = arith.maximumf %14, %15 : vector<5x16xf32>
      %17 = arith.maximumf %13, %16 : vector<5x16xf32>
      %18 = arith.truncf %17 : vector<5x16xf32> to vector<5x16xbf16>
      %c0_8 = arith.constant 0 : index
      %19 = arith.index_cast %arg5 : i32 to index
      %c0_9 = arith.constant 0 : index
      %c0_10 = arith.constant 0 : index
      %20 = vector.load %arg4[%c0_8, %19, %c0_9, %c0_10] : memref<1x5x5x16xbf16, #tpu.memory_space<vmem>>, vector<1x1x5x16xbf16>
      %21 = vector.shape_cast %20 : vector<1x1x5x16xbf16> to vector<5x16xbf16>
      %22 = vector.shape_cast %18 : vector<5x16xbf16> to vector<1x1x5x16xbf16>
      tpu.vector_store %arg4[%c0_8, %19, %c0_9, %c0_10], %22 {strides = array<i32>} : memref<1x5x5x16xbf16, #tpu.memory_space<vmem>>, vector<1x1x5x16xbf16>,
    }
    %c5_i32_3 = arith.constant 5 : i32
    return
  }
  func.func @transform_0(%arg0: i32) -> (i32, i32, i32, i32) {
    %c0_i32 = arith.constant 0 : i32
    %c0_i32_0 = arith.constant 0 : i32
    %c0_i32_1 = arith.constant 0 : i32
    %c0_i32_2 = arith.constant 0 : i32
    return %arg0, %c0_i32, %c0_i32_0, %c0_i32_1 : i32, i32, i32, i32
  }
  func.func @transform_1(%arg0: i32) -> (i32, i32) {
    %c0_i32 = arith.constant 0 : i32
    %c0_i32_0 = arith.constant 0 : i32
    %c0_i32_1 = arith.constant 0 : i32
    return %c0_i32, %c0_i32_0 : i32, i32
  }
  func.func @transform_2(%arg0: i32) -> (i32, i32) {
    %c0_i32 = arith.constant 0 : i32
    %c0_i32_0 = arith.constant 0 : i32
    %c0_i32_1 = arith.constant 0 : i32
    return %c0_i32, %c0_i32_0 : i32, i32
  }
  func.func @transform_3(%arg0: i32) -> (i32, i32, i32, i32) {
    %c0_i32 = arith.constant 0 : i32
    %c0_i32_0 = arith.constant 0 : i32
    %c0_i32_1 = arith.constant 0 : i32
    %c0_i32_2 = arith.constant 0 : i32
    return %arg0, %c0_i32, %c0_i32_0, %c0_i32_1 : i32, i32, i32, i32
  }
}

module attributes {stable_mosaic.version = 11 : i64} {
  func.func @_mlp_head_kernel(%arg0: i32, %arg1: memref<8x400xbf16, #tpu.memory_space<vmem>>, %arg2: memref<400x120xbf16, #tpu.memory_space<vmem>>, %arg3: memref<1x120xf32, #tpu.memory_space<vmem>>, %arg4: memref<120x84xbf16, #tpu.memory_space<vmem>>, %arg5: memref<1x84xf32, #tpu.memory_space<vmem>>, %arg6: memref<84x10xbf16, #tpu.memory_space<vmem>>, %arg7: memref<1x10xf32, #tpu.memory_space<vmem>>, %arg8: memref<8x10xf32, #tpu.memory_space<vmem>>) attributes {dimension_semantics = [#tpu.dimension_semantics<parallel>], iteration_bounds = array<i64: 2>, scalar_prefetch = 0 : i64, scratch_operands = 0 : i64, tpu.core_type = #tpu.core_type<tc>, window_params = [{transform_indices = @transform_0, window_bounds = array<i64: 8, 400>}, {pipeline_mode = #tpu.pipeline_mode<synchronous>, transform_indices = @transform_1, window_bounds = array<i64: 400, 120>}, {pipeline_mode = #tpu.pipeline_mode<synchronous>, transform_indices = @transform_2, window_bounds = array<i64: 1, 120>}, {pipeline_mode = #tpu.pipeline_mode<synchronous>, transform_indices = @transform_3, window_bounds = array<i64: 120, 84>}, {pipeline_mode = #tpu.pipeline_mode<synchronous>, transform_indices = @transform_4, window_bounds = array<i64: 1, 84>}, {pipeline_mode = #tpu.pipeline_mode<synchronous>, transform_indices = @transform_5, window_bounds = array<i64: 84, 10>}, {pipeline_mode = #tpu.pipeline_mode<synchronous>, transform_indices = @transform_6, window_bounds = array<i64: 1, 10>}, {transform_indices = @transform_7, window_bounds = array<i64: 8, 10>}]} {
    %c0 = arith.constant 0 : index
    %c0_0 = arith.constant 0 : index
    %0 = vector.load %arg1[%c0, %c0_0] : memref<8x400xbf16, #tpu.memory_space<vmem>>, vector<8x400xbf16>
    %c0_1 = arith.constant 0 : index
    %c0_2 = arith.constant 0 : index
    %1 = vector.load %arg2[%c0_1, %c0_2] : memref<400x120xbf16, #tpu.memory_space<vmem>>, vector<400x120xbf16>
    %cst = arith.constant dense<0.000000e+00> : vector<8x120xf32>
    %2 = tpu.matmul %0, %1, %cst {dimension_numbers = #tpu.dot_dimension_numbers<[1], [0], [0], [1], [0, 0, 1, 1], [], []>} : vector<8x400xbf16>, vector<400x120xbf16>, vector<8x120xf32> -> vector<8x120xf32>
    %c0_3 = arith.constant 0 : index
    %c0_4 = arith.constant 0 : index
    %3 = vector.load %arg3[%c0_3, %c0_4] : memref<1x120xf32, #tpu.memory_space<vmem>>, vector<1x120xf32>
    %4 = vector.broadcast %3 : vector<1x120xf32> to vector<8x120xf32>
    %5 = arith.addf %2, %4 : vector<8x120xf32>
    %cst_5 = arith.constant 0.000000e+00 : f32
    %6 = vector.broadcast %cst_5 : f32 to vector<8x120xf32>
    %7 = arith.maximumf %5, %6 : vector<8x120xf32>
    %8 = arith.truncf %7 : vector<8x120xf32> to vector<8x120xbf16>
    %c0_6 = arith.constant 0 : index
    %c0_7 = arith.constant 0 : index
    %9 = vector.load %arg4[%c0_6, %c0_7] : memref<120x84xbf16, #tpu.memory_space<vmem>>, vector<120x84xbf16>
    %cst_8 = arith.constant dense<0.000000e+00> : vector<8x84xf32>
    %10 = tpu.matmul %8, %9, %cst_8 {dimension_numbers = #tpu.dot_dimension_numbers<[1], [0], [0], [1], [0, 0, 1, 1], [], []>} : vector<8x120xbf16>, vector<120x84xbf16>, vector<8x84xf32> -> vector<8x84xf32>
    %c0_9 = arith.constant 0 : index
    %c0_10 = arith.constant 0 : index
    %11 = vector.load %arg5[%c0_9, %c0_10] : memref<1x84xf32, #tpu.memory_space<vmem>>, vector<1x84xf32>
    %12 = vector.broadcast %11 : vector<1x84xf32> to vector<8x84xf32>
    %13 = arith.addf %10, %12 : vector<8x84xf32>
    %cst_11 = arith.constant 0.000000e+00 : f32
    %14 = vector.broadcast %cst_11 : f32 to vector<8x84xf32>
    %15 = arith.maximumf %13, %14 : vector<8x84xf32>
    %16 = arith.truncf %15 : vector<8x84xf32> to vector<8x84xbf16>
    %c0_12 = arith.constant 0 : index
    %c0_13 = arith.constant 0 : index
    %17 = vector.load %arg6[%c0_12, %c0_13] : memref<84x10xbf16, #tpu.memory_space<vmem>>, vector<84x10xbf16>
    %cst_14 = arith.constant dense<0.000000e+00> : vector<8x10xf32>
    %18 = tpu.matmul %16, %17, %cst_14 {dimension_numbers = #tpu.dot_dimension_numbers<[1], [0], [0], [1], [0, 0, 1, 1], [], []>} : vector<8x84xbf16>, vector<84x10xbf16>, vector<8x10xf32> -> vector<8x10xf32>
    %c0_15 = arith.constant 0 : index
    %c0_16 = arith.constant 0 : index
    %19 = vector.load %arg7[%c0_15, %c0_16] : memref<1x10xf32, #tpu.memory_space<vmem>>, vector<1x10xf32>
    %20 = vector.broadcast %19 : vector<1x10xf32> to vector<8x10xf32>
    %21 = arith.addf %18, %20 : vector<8x10xf32>
    %c0_17 = arith.constant 0 : index
    %c0_18 = arith.constant 0 : index
    %22 = vector.load %arg8[%c0_17, %c0_18] : memref<8x10xf32, #tpu.memory_space<vmem>>, vector<8x10xf32>
    tpu.vector_store %arg8[%c0_17, %c0_18], %21 {strides = array<i32>} : memref<8x10xf32, #tpu.memory_space<vmem>>, vector<8x10xf32>,
    return
  }
  func.func @transform_0(%arg0: i32) -> (i32, i32) {
    %c0_i32 = arith.constant 0 : i32
    %c0_i32_0 = arith.constant 0 : i32
    return %arg0, %c0_i32 : i32, i32
  }
  func.func @transform_1(%arg0: i32) -> (i32, i32) {
    %c0_i32 = arith.constant 0 : i32
    %c0_i32_0 = arith.constant 0 : i32
    %c0_i32_1 = arith.constant 0 : i32
    return %c0_i32, %c0_i32_0 : i32, i32
  }
  func.func @transform_2(%arg0: i32) -> (i32, i32) {
    %c0_i32 = arith.constant 0 : i32
    %c0_i32_0 = arith.constant 0 : i32
    %c0_i32_1 = arith.constant 0 : i32
    return %c0_i32, %c0_i32_0 : i32, i32
  }
  func.func @transform_3(%arg0: i32) -> (i32, i32) {
    %c0_i32 = arith.constant 0 : i32
    %c0_i32_0 = arith.constant 0 : i32
    %c0_i32_1 = arith.constant 0 : i32
    return %c0_i32, %c0_i32_0 : i32, i32
  }
  func.func @transform_4(%arg0: i32) -> (i32, i32) {
    %c0_i32 = arith.constant 0 : i32
    %c0_i32_0 = arith.constant 0 : i32
    %c0_i32_1 = arith.constant 0 : i32
    return %c0_i32, %c0_i32_0 : i32, i32
  }
  func.func @transform_5(%arg0: i32) -> (i32, i32) {
    %c0_i32 = arith.constant 0 : i32
    %c0_i32_0 = arith.constant 0 : i32
    %c0_i32_1 = arith.constant 0 : i32
    return %c0_i32, %c0_i32_0 : i32, i32
  }
  func.func @transform_6(%arg0: i32) -> (i32, i32) {
    %c0_i32 = arith.constant 0 : i32
    %c0_i32_0 = arith.constant 0 : i32
    %c0_i32_1 = arith.constant 0 : i32
    return %c0_i32, %c0_i32_0 : i32, i32
  }
  func.func @transform_7(%arg0: i32) -> (i32, i32) {
    %c0_i32 = arith.constant 0 : i32
    %c0_i32_0 = arith.constant 0 : i32
    return %arg0, %c0_i32 : i32, i32
  }
}

</mosaic_0001>

<bundles_post_ra>
// kernel: letnet_forward.3
= control target key start
LH: loop header
LB: loop body
LE: loop exit
PB: predicated region body
PF: predicated region fallthrough
CT: control target
= control target key end

     0   :  { %s601_s12 = smov 0   ;;  %s711_s0 = inlined_call_operand.vmem [shape: bf16[2,15,60,75], index: 0, kind: input, shape index: {}]   ;;  %s712_s1 = inlined_call_operand.vmem [shape: bf16[75,6], index: 1, kind: input, shape index: {}]   ;;  %s713_s2 = inlined_call_operand.vmem [shape: f32[1,6], index: 2, kind: input, shape index: {}]   ;;  %s714_s3 = inlined_call_operand.vmem [shape: bf16[2,15,15,6], index: 3, kind: output, shape index: {}]  }
   0x1 LB: > { %s471_s13 = sadd.s32 4294967295, %s574_s12   ;;  %p475_p0 = scmp.ge.s32.totalorder %s574_s12, 1  ;;  %s574_s12 = sphi %s601_s12, %s13_s12  }
   0x2   : > { %p137_p1 = scmp.lt.s32.totalorder %s574_s12, 3 }
   0x4   : > { %p138_p2 = pnand %p475_p0, %p137_p1 }
   0x5   : > { %p161_p3 = scmp.lt.s32.totalorder (!%p138_p2), %s471_s13, 1  ;;  %s674_s19 = smov (!%p138_p2), 0  }
   0x6   : > { %141 = sbr.rel (%p138_p2) target bundleno = 260 (0x104), region = 32 }
   0xb   : > { %v612_v0 = vld [vmem:[%s712_s1] sm:$0xf]  ;;  %v617_v1 = vld [vmem:[%s712_s1 + $0x4] sm:$0xf]  ;;  %v622_v2 = vld [vmem:[%s712_s1 + $0x8] sm:$0xf] }
   0xc   : > { %v627_v3 = vld [vmem:[%s712_s1 + $0xc] sm:$0xf]  ;;  %v632_v4 = vld [vmem:[%s712_s1 + $0x10] sm:$0xf]  ;;  %s716_s13 = smov (!%p161_p3, %s471_s13), 1 }
   0xd   : > { %v637_v5 = vld [vmem:[%s712_s1 + $0x14] sm:$0xf]  ;;  %v642_v6 = vld [vmem:[%s712_s1 + $0x18] sm:$0xf]  ;;  %v647_v7 = vld [vmem:[%s712_s1 + $0x1c] sm:$0xf] }
   0xe   : > { %v652_v8 = vld [vmem:[%s712_s1 + $0x20] sm:$0xf]  ;;  %v657_v9 = vld [vmem:[%s712_s1 + $0x24] sm:$0x3]  ;;  %s541_s7 = smul.u32 480, %s716_s13 }
   0xf   : > { %v662_v10 = vld [vmem:[%s713_s2] ss:$0 sm:$0xff]  ;;  %s542_s10 = smul.u32 120, %s716_s13 }
  0x10   : > { %s667_s15 = scalar_lea.vmem %s711_s0, %s541_s7 }
  0x11   : > { %s672_s18 = scalar_lea.vmem %s714_s3, %s542_s10 }
  0x12 LB: >> { %v489_v11 = vcombine.low %v652_v8, %v657_v9  ;;  %vm268_vm0 = vcmask 1044480   ;;  %vm269_vm1 = vcmask 1045504   ;;  %v580_v12 = vmov 65535   ;;  %s500_s13 = sshll.u32 %s578_s19, 5  ;;  %s503_s21 = sshll.u32 %s578_s19, 3  ;;  %s578_s19 = sphi %s674_s19, %s188_s19  }
  0x13   : >> { %v270_v13 = vsel %vm268_vm0, 4294967295, %v580_v12  ;;  %v488_v16 = vcombine.low %v642_v6, %v647_v7  ;;  %s191_s20 = scalar_lea.vmem %s667_s15, %s500_s13  ;;  %vm255_vm2 = vcmask 613376   ;;  %v487_v19 = vcombine.low %v632_v4, %v637_v5  ;;  %s398_s22 = scalar_lea.vmem %s672_s18, %s503_s21 }
  0x14   : >> { %v271_v14 = vsel %vm269_vm1, %v270_v13, 0  ;;  %v560_v17 = vld [vmem:[%s191_s20] sm:$0xff]   ;;  %v561_v18 = vld [vmem:[%s191_s20 + $0x10] sm:$0xff]   ;;  %v486_v20 = vcombine.low %v622_v2, %v627_v3  ;;  %v485_v21 = vcombine.low %v612_v0, %v617_v1  ;;  %v562_v22 = vld [vmem:[%s191_s20 + $0x8] sm:$0xff]   ;;  %vm351_vm3 = vcmask 1040384   ;;  %s188_s19 = sadd.s32 1, %s578_s19  }
  0x15   : >> { %v273_v15 = vand.u32 %v489_v11, %v271_v14  ;;  %523 = vmatprep.mubr.msk.bf16.mxu0 %vm255_vm2, %v560_v17  ;;  %527 = vmatprep.mubr.msk.bf16.mxu1 %vm255_vm2, %v561_v18  ;;  %v563_v23 = vld [vmem:[%s191_s20 + $0x18] sm:$0x3f]   ;;  %vm378_vm4 = vcmask 1041408   ;;  %vm399_vm5 = vcmask 44032   ;;  %vm402_vm6 = vsmask.f32 3328 }
  0x16   : >> { %vm403_vm7 = vmand %vm399_vm5, %vm402_vm6  ;;  %v404_v17 = vld [vmem:[%s398_s22 + $0x4] sm:$0xf]  ;;  %p185_p4 = scmp.ge.s32.totalorder %s188_s19, 15  }
  0x17   : >> { %513 = vmatprep.subr.bf16.mxu0 %v273_v15  ;;  %531 = vmatprep.subr.bf16.mxu1 %v273_v15 }
  0x18   : >> { %514 = vmatpush3.bf16.msra.mxu0 %v273_v15  ;;  %536 = vmatpush3.bf16.msra.mxu1 %v273_v15 }
  0x19   : >> { %515 = vmatprep.subr.bf16.mxu0 %v488_v16  ;;  %532 = vmatprep.subr.bf16.mxu1 %v488_v16 }
  0x1c   : >> { %516 = vmatpush3.bf16.msra.mxu0 %v488_v16  ;;  %537 = vmatpush3.bf16.msra.mxu1 %v488_v16 }
  0x1d   : >> { %517 = vmatprep.subr.bf16.mxu0 %v487_v19  ;;  %533 = vmatprep.subr.bf16.mxu1 %v487_v19 }
  0x20   : >> { %518 = vmatpush3.bf16.msra.mxu0 %v487_v19  ;;  %538 = vmatpush3.bf16.msra.mxu1 %v487_v19 }
  0x21   : >> { %519 = vmatprep.subr.bf16.mxu0 %v486_v20  ;;  %534 = vmatprep.subr.bf16.mxu1 %v486_v20 }
  0x24   : >> { %520 = vmatpush3.bf16.msra.mxu0 %v486_v20  ;;  %539 = vmatpush3.bf16.msra.mxu1 %v486_v20 }
  0x25   : >> { %521 = vmatprep.subr.bf16.mxu0 %v485_v21  ;;  %535 = vmatprep.subr.bf16.mxu1 %v485_v21 }
  0x28   : >> { %522 = vmatpush3.bf16.msra.mxu0 %v485_v21  ;;  %540 = vmatpush3.bf16.msra.mxu1 %v485_v21 }
  0x2b   : >> { %524 = vmatmul.mubr.msk.bf16.vlgmr.msra.gmra.mxu0 %vm255_vm2, %v562_v22  ;;  %528 = vmatmul.mubr.msk.bf16.vlgmr.msra.gmra.mxu1 %vm255_vm2, %v563_v23 }
  0xeb   : >> { %v525_v24 = vpop.f32.mrf.mxu0  ;;  %v529_v25 = vpop.f32.mrf.mxu1 }
  0xec   : >> { %v318_v26 = vadd.f32 %v525_v24, %v662_v10  ;;  %v334_v27 = vadd.f32 %v529_v25, %v662_v10 }
  0xed   : >> { %v309_v28 = vpop.f32.mrf.mxu0  ;;  %v325_v29 = vpop.f32.mrf.mxu1 }
  0xee   : >> { %v342_v32 = vmax.f32 %v318_v26, 0.0  ;;  %v346_v33 = vmax.f32 %v334_v27, 0.0  ;;  %v326_v40 = vadd.f32 %v662_v10, %v325_v29  ;;  %v310_v49 = vadd.f32 %v662_v10, %v309_v28 }
  0xef   : >> { %v526_v30 = vpop.f32.mrf.mxu0  ;;  %v530_v31 = vpop.f32.mrf.mxu1 }
  0xf0   : >> { %v321_v34 = vadd.f32 %v526_v30, %v662_v10  ;;  %v337_v35 = vadd.f32 %v530_v31, %v662_v10  ;;  %v353_v45 = vrot.slane %v342_v32, 7  ;;  %v365_v46 = vrot.slane %v346_v33, 7 }
  0xf1   : >> { %v312_v36 = vpop.f32.mrf.mxu0  ;;  %v328_v37 = vpop.f32.mrf.mxu1  ;;  %v344_v52 = vmax.f32 %v326_v40, 0.0  ;;  %v340_v60 = vmax.f32 %v310_v49, 0.0 }
  0xf2   : >> { %v313_v38 = vadd.f32 %v662_v10, %v312_v36  ;;  %v329_v39 = vadd.f32 %v662_v10, %v328_v37  ;;  %v343_v41 = vmax.f32 %v321_v34, 0.0  ;;  %v347_v42 = vmax.f32 %v337_v35, 0.0 }
  0xf4   : >> { %v341_v43 = vmax.f32 %v313_v38, 0.0  ;;  %v345_v44 = vmax.f32 %v329_v39, 0.0  ;;  %v355_v47 = vrot.slane %v343_v41, 7  ;;  %v367_v48 = vrot.slane %v347_v42, 7 }
  0xf6   : >> { %v352_v50 = vrot.slane %v341_v43, 7  ;;  %v364_v51 = vrot.slane %v345_v44, 7  ;;  %v368_v53 = vsel %vm351_vm3, %v365_v46, %v367_v48  ;;  %v356_v57 = vsel %vm351_vm3, %v353_v45, %v355_v47 }
  0xf7   : >> { %v374_v59 = vmax.f32 %v345_v44, %v368_v53  ;;  %v360_v12 = vmax.f32 %v341_v43, %v356_v57 }
  0xf8   : >> { %v366_v54 = vsel %vm351_vm3, %v364_v51, %v365_v46  ;;  %v372_v55 = vmax.f32 %v343_v41, %v364_v51  ;;  %v354_v56 = vsel %vm351_vm3, %v352_v50, %v353_v45 }
  0xf9   : >> { %v373_v58 = vmax.f32 %v344_v52, %v366_v54  ;;  %v382_v63 = vrot.slane %v374_v59, 6  ;;  %v359_v11 = vmax.f32 %v340_v60, %v354_v56 }
  0xfa   : >> { %v379_v61 = vrot.slane %v372_v55, 6 }
  0xfb   : >> { %v380_v62 = vrot.slane %v373_v58, 6 }
  0xfd   : >> { %v381_v13 = vsel %vm378_vm4, %v379_v61, %v380_v62  ;;  %v383_v14 = vsel %vm378_vm4, %v380_v62, %v382_v63 }
  0xfe   : >> { %v386_v15 = vmax.f32 %v359_v11, %v381_v13  ;;  %v387_v16 = vmax.f32 %v360_v12, %v383_v14 }
  0xff   : > { %187 = sbr.rel (!%p185_p4) target bundleno = 18 (0x12), region = 71 }
 0x100   : >> { %v501_v18 = vpack.c.bf16 %v386_v15, %v386_v15  ;;  %v502_v19 = vpack.c.bf16 %v387_v16, %v387_v16 }
 0x102   : >> { %400 = vst.msk [vmem:[%s398_s22] sm:$0xf] %vm399_vm5, %v501_v18  ;;  %v405_v20 = vsel %vm403_vm7, %v502_v19, %v404_v17 }
 0x103   : >> { %406 = vst [vmem:[%s398_s22 + $0x4] sm:$0xf] %v405_v20 }
 0x104 PF: > { %s13_s12 = sadd.s32 1, %s574_s12  }
 0x105   : > { %p10_p5 = scmp.ge.s32.totalorder %s13_s12, 4  }
 0x107   :  { %12 = sbr.rel (!%p10_p5) target bundleno = 1 (0x1), region = 82 }

// kernel: letnet_forward.4
= control target key start
LH: loop header
LB: loop body
LE: loop exit
PB: predicated region body
PF: predicated region fallthrough
CT: control target
= control target key end

     0   :  { %s543_s12 = smov 0   ;;  %s707_s0 = inlined_call_operand.vmem [shape: bf16[2,5,20,150], index: 0, kind: input, shape index: {}]   ;;  %s708_s1 = inlined_call_operand.vmem [shape: bf16[150,16], index: 1, kind: input, shape index: {}]   ;;  %s709_s2 = inlined_call_operand.vmem [shape: f32[1,16], index: 2, kind: input, shape index: {}]   ;;  %s710_s3 = inlined_call_operand.vmem [shape: bf16[2,5,5,16], index: 3, kind: output, shape index: {}]  }
   0x1 LB: > { %s433_s13 = sadd.s32 4294967295, %s516_s12   ;;  %p437_p0 = scmp.ge.s32.totalorder %s516_s12, 1  ;;  %s516_s12 = sphi %s543_s12, %s13_s12  }
   0x2   : > { %p137_p1 = scmp.lt.s32.totalorder %s516_s12, 3 }
   0x4   : > { %p138_p2 = pnand %p437_p0, %p137_p1 }
   0x5   : > { %p161_p3 = scmp.lt.s32.totalorder (!%p138_p2), %s433_s13, 1  ;;  %s661_s9 = smov (!%p138_p2), 0  }
   0x6   : > { %141 = sbr.rel (%p138_p2) target bundleno = 274 (0x112), region = 32 }
   0xb   : > { %v554_v0 = vld [vmem:[%s708_s1] sm:$0xf]  ;;  %v559_v1 = vld [vmem:[%s708_s1 + $0x4] sm:$0xf]  ;;  %v564_v2 = vld [vmem:[%s708_s1 + $0x8] sm:$0xf] }
   0xc   : > { %v569_v3 = vld [vmem:[%s708_s1 + $0xc] sm:$0xf]  ;;  %v574_v4 = vld [vmem:[%s708_s1 + $0x10] sm:$0xf]  ;;  %s712_s13 = smov (!%p161_p3, %s433_s13), 1 }
   0xd   : > { %v579_v5 = vld [vmem:[%s708_s1 + $0x14] sm:$0xf]  ;;  %v584_v6 = vld [vmem:[%s708_s1 + $0x18] sm:$0xf]  ;;  %v589_v7 = vld [vmem:[%s708_s1 + $0x1c] sm:$0xf] }
   0xe   : > { %v594_v8 = vld [vmem:[%s708_s1 + $0x20] sm:$0xf]  ;;  %v599_v9 = vld [vmem:[%s708_s1 + $0x24] sm:$0xf]  ;;  %s482_s7 = smul.u32 120, %s712_s13 }
   0xf   : > { %v604_v10 = vld [vmem:[%s708_s1 + $0x28] sm:$0xf]  ;;  %v609_v11 = vld [vmem:[%s708_s1 + $0x2c] sm:$0xf]  ;;  %s483_s14 = smul.u32 20, %s712_s13 }
  0x10   : > { %v614_v12 = vld [vmem:[%s708_s1 + $0x30] sm:$0xf]  ;;  %v619_v13 = vld [vmem:[%s708_s1 + $0x34] sm:$0xf]  ;;  %s624_s21 = scalar_lea.vmem %s707_s0, %s482_s7  ;;  %v629_v14 = vld [vmem:[%s708_s1 + $0x38] sm:$0xf] }
  0x11   : > { %v634_v15 = vld [vmem:[%s708_s1 + $0x3c] sm:$0xf]  ;;  %v639_v16 = vld [vmem:[%s708_s1 + $0x40] sm:$0xf]  ;;  %s644_s29 = scalar_lea.vmem %s710_s3, %s483_s14  ;;  %v649_v17 = vld [vmem:[%s708_s1 + $0x44] sm:$0xf] }
  0x12   : > { %v654_v18 = vld [vmem:[%s708_s1 + $0x48] sm:$0x7]  ;;  %v659_v19 = vld [vmem:[%s709_s2] ss:$0 sm:$0xff] }
  0x13 LB: >> { %v453_v20 = vcombine.low %v629_v14, %v634_v15  ;;  %v522_v21 = vmov 0   ;;  %v452_v22 = vcombine.low %v614_v12, %v619_v13  ;;  %s461_s10 = smul.u32 24, %s520_s9  ;;  %vm282_vm0 = vcmask 179200   ;;  %s458_s14 = sshll.u32 %s520_s9, 2  ;;  %s520_s9 = sphi %s661_s9, %s197_s9  }
  0x14   : >> { %293 = vmatprep.subr.bf16.mxu0 %v522_v21  ;;  %462 = vmatprep.subr.bf16.mxu1 %v522_v21  ;;  %v451_v23 = vcombine.low %v604_v10, %v609_v11  ;;  %v450_v27 = vcombine.low %v594_v8, %v599_v9  ;;  %v449_v28 = vcombine.low %v584_v6, %v589_v7  ;;  %vm289_vm1 = vcmask 1042432   ;;  %s362_s15 = scalar_lea.vmem %s644_s29, %s458_s14  ;;  %s197_s9 = sadd.s32 1, %s520_s9  }
  0x15   : >> { %294 = vmatpush1.bf16.msra.mxu0 %v453_v20  ;;  %472 = vmatpush1.bf16.msra.mxu1 %v453_v20  ;;  %s672_s11 = scalar_lea.vmem %s624_s21, %s461_s10  ;;  %v448_v29 = vcombine.low %v574_v4, %v579_v5  ;;  %v447_v30 = vcombine.low %v564_v2, %v569_v3  ;;  %v446_v31 = vcombine.low %v554_v0, %v559_v1  ;;  %vm363_vm2 = vcmask 124928   ;;  %v366_v60 = vld [vmem:[%s362_s15] sm:$0x7]  ;;  %p194_p4 = scmp.ge.s32.totalorder %s197_s9, 5  }
  0x16   : >> { %295 = vmatprep.subr.bf16.mxu0 %v522_v21  ;;  %463 = vmatprep.subr.bf16.mxu1 %v522_v21  ;;  %v503_v24 = vld [vmem:[%s672_s11 + $0x4] ss:$8 sps:$4 sm:$0xff]   ;;  %v203_v25 = vld [vmem:[%s672_s11 + $0x10] sm:$0x33]  ;;  %v455_v32 = vcombine.low %v654_v18, %v654_v18  ;;  %v454_v34 = vcombine.low %v639_v16, %v649_v17  ;;  %v501_v35 = vld [vmem:[%s672_s11] ss:$8 sps:$4 sm:$0xff]  }
  0x17   : >> { %v445_v26 = vcombine.high %v203_v25, %v203_v25  ;;  %456 = vmatprep.mubr.msk.bf16.mxu0 %vm282_vm0, %v503_v24  ;;  %v444_v36 = vcombine.low %v203_v25, %v203_v25  ;;  %vm364_vm3 = vsmask.f32 2304 }
  0x18   : >> { %v291_v33 = vsel %vm289_vm1, %v455_v32, 0  ;;  %vm365_vm4 = vmand %vm363_vm2, %vm364_vm3 }
  0x19   : >> { %296 = vmatpush1.bf16.msra.mxu0 %v452_v22  ;;  %473 = vmatpush1.bf16.msra.mxu1 %v452_v22 }
  0x1a   : >> { %297 = vmatprep.subr.bf16.mxu0 %v522_v21  ;;  %464 = vmatprep.subr.bf16.mxu1 %v522_v21 }
  0x1b   : >> { %457 = vmatprep.mubr.msk.bf16.mxu1 %vm282_vm0, %v445_v26 }
  0x1d   : >> { %298 = vmatpush1.bf16.msra.mxu0 %v451_v23  ;;  %474 = vmatpush1.bf16.msra.mxu1 %v451_v23 }
  0x1e   : >> { %299 = vmatprep.subr.bf16.mxu0 %v522_v21  ;;  %465 = vmatprep.subr.bf16.mxu1 %v522_v21 }
  0x21   : >> { %300 = vmatpush1.bf16.msra.mxu0 %v450_v27  ;;  %475 = vmatpush1.bf16.msra.mxu1 %v450_v27 }
  0x22   : >> { %301 = vmatprep.subr.bf16.mxu0 %v522_v21  ;;  %466 = vmatprep.subr.bf16.mxu1 %v522_v21 }
  0x25   : >> { %302 = vmatpush1.bf16.msra.mxu0 %v449_v28  ;;  %476 = vmatpush1.bf16.msra.mxu1 %v449_v28 }
  0x26   : >> { %303 = vmatprep.subr.bf16.mxu0 %v522_v21  ;;  %467 = vmatprep.subr.bf16.mxu1 %v522_v21 }
  0x29   : >> { %304 = vmatpush1.bf16.msra.mxu0 %v448_v29  ;;  %477 = vmatpush1.bf16.msra.mxu1 %v448_v29 }
  0x2a   : >> { %305 = vmatprep.subr.bf16.mxu0 %v522_v21  ;;  %468 = vmatprep.subr.bf16.mxu1 %v522_v21 }
  0x2d   : >> { %306 = vmatpush1.bf16.msra.mxu0 %v447_v30  ;;  %478 = vmatpush1.bf16.msra.mxu1 %v447_v30 }
  0x2e   : >> { %307 = vmatprep.subr.bf16.mxu0 %v522_v21  ;;  %469 = vmatprep.subr.bf16.mxu1 %v522_v21 }
  0x31   : >> { %308 = vmatpush1.bf16.msra.mxu0 %v446_v31  ;;  %479 = vmatpush1.bf16.msra.mxu1 %v446_v31 }
  0x32   : >> { %321 = vmatprep.subr.bf16.mxu0 %v522_v21  ;;  %470 = vmatprep.subr.bf16.mxu1 %v522_v21 }
  0x35   : >> { %322 = vmatpush2.bf16.msra.mxu0 %v291_v33  ;;  %480 = vmatpush2.bf16.msra.mxu1 %v291_v33 }
  0x36   : >> { %323 = vmatprep.subr.bf16.mxu0 %v522_v21  ;;  %471 = vmatprep.subr.bf16.mxu1 %v522_v21 }
  0x39   : >> { %324 = vmatpush2.bf16.msra.mxu0 %v454_v34  ;;  %481 = vmatpush2.bf16.msra.mxu1 %v454_v34 }
  0x3c   : >> { %326 = vmatmul.mubr.bf16.vlgmr.msra.gmra.mxu0 %v501_v35  ;;  %334 = vmatmul.mubr.bf16.vlgmr.msra.gmra.mxu1 %v444_v36 }
  0xfc   : >> { %v327_v37 = vpop.f32.mrf.mxu0  ;;  %v335_v38 = vpop.f32.mrf.mxu1 }
  0xfd   : >> { %v328_v39 = vadd.f32 %v659_v19, %v327_v37  ;;  %v336_v40 = vadd.f32 %v659_v19, %v335_v38 }
  0xfe   : >> { %v329_v41 = vpop.f32.mrf.mxu0  ;;  %v337_v42 = vpop.f32.mrf.mxu1 }
  0xff   : >> { %v343_v43 = vmax.f32 %v336_v40, 0.0  ;;  %v341_v46 = vmax.f32 %v328_v39, 0.0 }
 0x100   : >> { %v330_v44 = vpop.f32.mrf.mxu0  ;;  %v338_v45 = vpop.f32.mrf.mxu1 }
 0x101   : >> { %v331_v47 = vadd.f32 %v659_v19, %v330_v44  ;;  %v352_v50 = vrot.slane %v343_v43, 5  ;;  %v346_v52 = vrot.slane %v341_v46, 5 }
 0x102   : >> { %v332_v48 = vpop.f32.mrf.mxu0  ;;  %v339_v49 = vpop.f32.mrf.mxu1 }
 0x103   : >> { %v342_v51 = vmax.f32 %v331_v47, 0.0 }
 0x105   : >> { %v347_v53 = vrot.slane %v342_v51, 5 }
 0x107   : >> { %v348_v54 = vsel %vm289_vm1, %v346_v52, %v347_v53  ;;  %v353_v55 = vsel %vm289_vm1, %v347_v53, %v352_v50 }
 0x108   : >> { %v355_v56 = vmax.f32 %v342_v51, %v353_v55  ;;  %v350_v57 = vmax.f32 %v341_v46, %v348_v54 }
 0x10a   : >> { %v357_v58 = vrot.slane %v355_v56, 2 }
 0x10c   : >> { %v359_v59 = vmax.f32 %v350_v57, %v357_v58 }
 0x10d   : > { %196 = sbr.rel (!%p194_p4) target bundleno = 19 (0x13), region = 71 }
 0x10e   : >> { %v360_v61 = vpack.c.bf16 %v359_v59, %v359_v59 }
 0x110   : >> { %v367_v62 = vsel %vm365_vm4, %v360_v61, %v366_v60 }
 0x111   : >> { %368 = vst [vmem:[%s362_s15] sm:$0x7] %v367_v62 }
 0x112 PF: > { %s13_s12 = sadd.s32 1, %s516_s12  }
 0x113   : > { %p10_p5 = scmp.ge.s32.totalorder %s13_s12, 4  }
 0x115   :  { %12 = sbr.rel (!%p10_p5) target bundleno = 1 (0x1), region = 82 }

// kernel: letnet_forward.5
= control target key start
LH: loop header
LB: loop body
LE: loop exit
PB: predicated region body
PF: predicated region fallthrough
CT: control target
= control target key end

     0   :  { %s1096_s24 = smov 0   ;;  %s1272_s0 = inlined_call_operand.vmem [shape: bf16[16,400], index: 0, kind: input, shape index: {}]   ;;  %s1273_s1 = inlined_call_operand.vmem [shape: bf16[400,120], index: 1, kind: input, shape index: {}]   ;;  %s1274_s2 = inlined_call_operand.vmem [shape: f32[1,120], index: 2, kind: input, shape index: {}]   ;;  %s1275_s3 = inlined_call_operand.vmem [shape: bf16[120,84], index: 3, kind: input, shape index: {}]   ;;  %s1276_s4 = inlined_call_operand.vmem [shape: f32[1,84], index: 4, kind: input, shape index: {}]   ;;  %s1277_s5 = inlined_call_operand.vmem [shape: bf16[84,10], index: 5, kind: input, shape index: {}]   ;;  %s1278_s6 = inlined_call_operand.vmem [shape: f32[1,10], index: 6, kind: input, shape index: {}]   ;;  %s1279_s7 = inlined_call_operand.vmem [shape: f32[16,10], index: 7, kind: output, shape index: {}]  }
   0x1 LB: > { %s857_s25 = sadd.s32 4294967295, %s1051_s24   ;;  %p861_p0 = scmp.ge.s32.totalorder %s1051_s24, 1  ;;  %s1051_s24 = sphi %s1096_s24, %s17_s24  }
   0x2   : > { %p237_p1 = scmp.lt.s32.totalorder %s1051_s24, 3 }
   0x4   : > { %p238_p2 = pnand %p861_p0, %p237_p1 }
   0x5   : > { %p268_p3 = scmp.lt.s32.totalorder (!%p238_p2), %s857_s25, 1 }
   0x6   : > { %241 = sbr.rel (%p238_p2) target bundleno = 648 (0x288), region = 48 }
   0xb   : > { %v1002_v0 = vld [vmem:[%s1273_s1 + $0x78] sm:$0xff]   ;;  %v1053_v1 = vmov 0   ;;  %v1005_v4 = vld [vmem:[%s1273_s1 + $0x70] sm:$0xff]   ;;  %v1008_v7 = vld [vmem:[%s1273_s1 + $0x68] sm:$0xff]   ;;  %s1281_s25 = smov (!%p268_p3, %s857_s25), 1  ;;  %vm500_vm0 = vcmask 130048  }
   0xc   : > { %544 = vmatprep.subr.bf16.mxu1 %v1053_v1  ;;  %v1003_v2 = vld [vmem:[%s1273_s1 + $0xb8] sm:$0xff]   ;;  %917 = vmatprep.subr.bf16.mxu0 %v1002_v0  ;;  %v1006_v5 = vld [vmem:[%s1273_s1 + $0xb0] sm:$0xff]   ;;  %v1009_v8 = vld [vmem:[%s1273_s1 + $0xa8] sm:$0xff]   ;;  %s916_s14 = sshll.u32 %s1281_s25, 4  ;;  %vm657_vm1 = vcmask 1043456   ;;  %v1054_v33 = vmov 0.0  }
   0xd   : > { %v1004_v3 = vld [vmem:[%s1273_s1 + $0x38] sm:$0xff]   ;;  %545 = vmatpush1.bf16.msra.mxu1 %v1003_v2  ;;  %v1007_v6 = vld [vmem:[%s1273_s1 + $0x30] sm:$0xff]   ;;  %v1010_v9 = vld [vmem:[%s1273_s1 + $0x28] sm:$0xff]   ;;  %s272_s23 = scalar_lea.vmem %s1272_s0, %s916_s14  ;;  %vm1055_vm2 = vmmov 0   ;;  %vm758_vm3 = vcmask 1041408   ;;  %vm653_vm4 = vcmask 982016  }
   0xe   : > { %918 = vmatpush3.bf16.msra.mxu0 %v1004_v3  ;;  %546 = vmatprep.subr.bf16.mxu1 %v1053_v1  ;;  %v1011_v10 = vld [vmem:[%s1273_s1 + $0x60] sm:$0xff]   ;;  %v1014_v13 = vld [vmem:[%s1273_s1 + $0x58] sm:$0xff]   ;;  %v1017_v16 = vld [vmem:[%s1273_s1 + $0x50] sm:$0xff]   ;;  %vm754_vm5 = vcmask 687104   ;;  %s864_s28 = sshll.u32 %s1281_s25, 3  ;;  %vm802_vm6 = vcmask 80896  }
   0xf   : > { %919 = vmatprep.subr.bf16.mxu0 %v1005_v4  ;;  %v1012_v11 = vld [vmem:[%s1273_s1 + $0xa0] sm:$0xff]   ;;  %v1015_v14 = vld [vmem:[%s1273_s1 + $0x98] sm:$0xff]   ;;  %v1018_v17 = vld [vmem:[%s1273_s1 + $0x90] sm:$0xff]   ;;  %s276_s10 = scalar_lea.vmem %s1279_s7, %s864_s28 }
  0x10   : > { %v1013_v12 = vld [vmem:[%s1273_s1 + $0x20] sm:$0xff]   ;;  %v1016_v15 = vld [vmem:[%s1273_s1 + $0x18] sm:$0xff]   ;;  %v1019_v18 = vld [vmem:[%s1273_s1 + $0x10] sm:$0xff]  }
  0x11   : > { %547 = vmatpush1.bf16.msra.mxu1 %v1006_v5  ;;  %v1020_v19 = vld [vmem:[%s1273_s1 + $0x48] sm:$0xff]   ;;  %v278_v22 = vld [vmem:[%s272_s23] sm:$0xff]  ;;  %v1031_v27 = vld [vmem:[%s1275_s3 + $0x38] ss:$0 sps:$4 sm:$0xff]  }
  0x12   : > { %920 = vmatpush3.bf16.msra.mxu0 %v1007_v6  ;;  %548 = vmatprep.subr.bf16.mxu1 %v1053_v1  ;;  %v1021_v20 = vld [vmem:[%s1273_s1 + $0x88] sm:$0xff]   ;;  %v1023_v23 = vld [vmem:[%s1273_s1 + $0x40] sm:$0xff]   ;;  %v867_v24 = vcombine.high %v278_v22, %v278_v22  ;;  %v659_v31 = vsel %vm657_vm1, %v1031_v27, 0  ;;  %v866_v32 = vcombine.low %v278_v22, %v278_v22  ;;  %v1032_v35 = vld [vmem:[%s1275_s3 + $0x30] sm:$0xff]  }
  0x13   : > { %921 = vmatprep.subr.bf16.mxu0 %v1008_v7  ;;  %v1022_v21 = vld [vmem:[%s1273_s1 + $0x8] sm:$0xff]   ;;  %v1024_v28 = vld [vmem:[%s1273_s1 + $0x80] sm:$0xff]   ;;  %v1035_v38 = vld [vmem:[%s1275_s3 + $0x18] sm:$0xff]  }
  0x14   : > { %v279_v25 = vld [vmem:[%s272_s23 + $0x8] sm:$0xff]  ;;  %536 = vmatprep.mubr.bf16.mxu0 %v867_v24  ;;  %v1025_v29 = vld [vmem:[%s1273_s1] sm:$0xff]   ;;  %v1036_v39 = vld [vmem:[%s1275_s3 + $0x10] sm:$0xff]  }
  0x15   : > { %549 = vmatpush1.bf16.msra.mxu1 %v1009_v8  ;;  %v869_v26 = vcombine.high %v279_v25, %v279_v25  ;;  %v1028_v30 = vld [vmem:[%s1273_s1 + $0xc0] sm:$0xff]   ;;  %v868_v34 = vcombine.low %v279_v25, %v279_v25  ;;  %v1033_v36 = vld [vmem:[%s1275_s3 + $0x28] sm:$0xff]   ;;  %v1041_v45 = vld [vmem:[%s1277_s5 + $0x18] sm:$0xff]  }
  0x16   : > { %922 = vmatpush3.bf16.msra.mxu0 %v1010_v9  ;;  %550 = vmatprep.subr.bf16.mxu1 %v1053_v1  ;;  %v1034_v37 = vld [vmem:[%s1275_s3 + $0x20] sm:$0xff]   ;;  %v1037_v40 = vld [vmem:[%s1275_s3 + $0x8] sm:$0xff]   ;;  %v1042_v46 = vld [vmem:[%s1277_s5 + $0x10] sm:$0xff]  }
  0x17   : > { %923 = vmatprep.subr.bf16.mxu0 %v1011_v10  ;;  %895 = vmatprep.mubr.msk.bf16.mxu1 %vm500_vm0, %v869_v26  ;;  %v1038_v41 = vld [vmem:[%s1275_s3] sm:$0xff]   ;;  %v1039_v42 = vld [vmem:[%s1277_s5 + $0x28] ss:$0 sps:$4 sm:$0x33]  }
  0x18   : > { %v760_v43 = vsel %vm758_vm3, %v1039_v42, 0  ;;  %v1040_v44 = vld [vmem:[%s1277_s5 + $0x20] sm:$0xff]   ;;  %v1043_v61 = vld [vmem:[%s1277_s5 + $0x8] sm:$0xff]  }
  0x19   : > { %551 = vmatpush1.bf16.msra.mxu1 %v1012_v11  ;;  %v865_v49 = vld [vmem:[%s1274_s2] ss:$0 sm:$0xff] }
  0x1a   : > { %924 = vmatpush3.bf16.msra.mxu0 %v1013_v12  ;;  %552 = vmatprep.subr.bf16.mxu1 %v1053_v1  ;;  %v1044_v62 = vld [vmem:[%s1277_s5] sm:$0xff]  }
  0x1b   : > { %925 = vmatprep.subr.bf16.mxu0 %v1014_v13  ;;  %v896_v63 = vld [vmem:[%s1276_s4] ss:$0 sm:$0xff] }
  0x1c   : > { %v906_v7 = vld [vmem:[%s1278_s6] ss:$0 sm:$0xff] }
  0x1d   : > { %553 = vmatpush1.bf16.msra.mxu1 %v1015_v14 }
  0x1e   : > { %926 = vmatpush3.bf16.msra.mxu0 %v1016_v15  ;;  %554 = vmatprep.subr.bf16.mxu1 %v1053_v1 }
  0x1f   : > { %927 = vmatprep.subr.bf16.mxu0 %v1017_v16 }
  0x21   : > { %555 = vmatpush1.bf16.msra.mxu1 %v1018_v17 }
  0x22   : > { %928 = vmatpush3.bf16.msra.mxu0 %v1019_v18  ;;  %556 = vmatprep.subr.bf16.mxu1 %v1053_v1 }
  0x23   : > { %929 = vmatprep.subr.bf16.mxu0 %v1020_v19 }
  0x25   : > { %557 = vmatpush1.bf16.msra.mxu1 %v1021_v20 }
  0x26   : > { %930 = vmatpush3.bf16.msra.mxu0 %v1022_v21  ;;  %558 = vmatprep.subr.bf16.mxu1 %v1053_v1 }
  0x27   : > { %931 = vmatprep.subr.bf16.mxu0 %v1023_v23 }
  0x29   : > { %559 = vmatpush1.bf16.msra.mxu1 %v1024_v28 }
  0x2a   : > { %932 = vmatpush3.bf16.msra.mxu0 %v1025_v29  ;;  %574 = vmatprep.subr.bf16.mxu1 %v1053_v1 }
  0x2b   : > { %955 = vmatprep.subr.bf16.mxu0 %v1054_v33 }
  0x2d   : > { %537 = vmatmul.mubr.bf16.vlgmr.msra.gmra.mxu0 %v866_v32  ;;  %575 = vmatpush2.bf16.msra.mxu1 %v1028_v30 }
  0x2e   : > { %956 = vmatpush3.bf16.msra.mxu0 %v659_v31  ;;  %975 = vmatprep.subr.bf16.mxu1 %v1054_v33 }
  0x2f   : > { %957 = vmatprep.subr.bf16.mxu0 %v1054_v33  ;;  %971 = vmatprep.mubr.msk.bf16.mxu0 %vm1055_vm2, %v1054_v33 }
  0x30   : > { %577 = vmatmul.mubr.bf16.vlgmr.msra.gmra.mxu1 %v868_v34 }
  0x31   : > { %987 = vmatprep.mubr.msk.bf16.mxu1 %vm1055_vm2, %v1054_v33  ;;  %976 = vmatpush3.bf16.msra.mxu1 %v760_v43 }
  0x32   : > { %958 = vmatpush3.bf16.msra.mxu0 %v1032_v35  ;;  %977 = vmatprep.subr.bf16.mxu1 %v1054_v33 }
  0x33   : > { %959 = vmatprep.subr.bf16.mxu0 %v1054_v33 }
  0x35   : > { %978 = vmatpush3.bf16.msra.mxu1 %v1040_v44 }
  0x36   : > { %960 = vmatpush3.bf16.msra.mxu0 %v1033_v36  ;;  %979 = vmatprep.subr.bf16.mxu1 %v1054_v33 }
  0x37   : > { %961 = vmatprep.subr.bf16.mxu0 %v1054_v33 }
  0x39   : > { %980 = vmatpush3.bf16.msra.mxu1 %v1041_v45 }
  0x3a   : > { %962 = vmatpush3.bf16.msra.mxu0 %v1034_v37  ;;  %981 = vmatprep.subr.bf16.mxu1 %v1054_v33 }
  0x3b   : > { %963 = vmatprep.subr.bf16.mxu0 %v1054_v33 }
  0x3d   : > { %982 = vmatpush3.bf16.msra.mxu1 %v1042_v46 }
  0x3e   : > { %964 = vmatpush3.bf16.msra.mxu0 %v1035_v38  ;;  %983 = vmatprep.subr.bf16.mxu1 %v1054_v33 }
  0x3f   : > { %965 = vmatprep.subr.bf16.mxu0 %v1054_v33 }
  0x41   : > { %984 = vmatpush3.bf16.msra.mxu1 %v1043_v61 }
  0x42   : > { %966 = vmatpush3.bf16.msra.mxu0 %v1036_v39  ;;  %985 = vmatprep.subr.bf16.mxu1 %v1054_v33 }
  0x43   : > { %967 = vmatprep.subr.bf16.mxu0 %v1054_v33 }
  0x45   : > { %986 = vmatpush3.bf16.msra.mxu1 %v1044_v62 }
  0x46   : > { %968 = vmatpush3.bf16.msra.mxu0 %v1037_v40 }
  0x47   : > { %969 = vmatprep.subr.bf16.mxu0 %v1054_v33 }
  0x4a   : > { %970 = vmatpush3.bf16.msra.mxu0 %v1038_v41 }
  0xed   : > { %v933_v47 = vpop.f32.mrf.mxu0 }
  0xef   : > { %v934_v48 = vpop.f32.mrf.mxu0 }
  0xf0   : > { %v935_v50 = vadd.f32 %v934_v48, %v933_v47  ;;  %v578_v51 = vpop.f32.mrf.mxu1 }
  0xf1   : > { %v936_v52 = vpop.f32.mrf.mxu0 }
  0xf2   : > { %v539_v53 = vadd.f32 %v935_v50, %v865_v49  ;;  %v580_v54 = vpop.f32.mrf.mxu1 }
  0xf3   : > { %v937_v55 = vpop.f32.mrf.mxu0 }
  0xf4   : > { %v579_v56 = vadd.f32 %v578_v51, %v539_v53  ;;  %v581_v57 = vpop.f32.mrf.mxu1 }
  0xf6   : > { %v584_v58 = vmax.f32 %v579_v56, 0.0  ;;  %v582_v59 = vpop.f32.mrf.mxu1 }
  0xf8   : > { %v585_v60 = vpack.c.bf16 %v584_v58, %v584_v58 }
  0xfa   : > { %972 = vmatmul.mubr.msk.bf16.vlgmr.msra.gmra.mxu0 %vm653_vm4, %v585_v60 }
 0x1ba   : > { %v695_v0 = vpop.f32.mrf.mxu0 }
 0x1bb   : > { %v696_v1 = vadd.f32 %v896_v63, %v695_v0 }
 0x1bc   : > { %v973_v2 = vpop.f32.mrf.mxu0 }
 0x1bd   : > { %v701_v3 = vmax.f32 %v696_v1, 0.0 }
 0x1be   : > { %v698_v4 = vpop.f32.mrf.mxu0 }
 0x1bf   : > { %v702_v5 = vpack.c.bf16 %v701_v3, %v701_v3 }
 0x1c0   : > { %v974_v6 = vpop.f32.mrf.mxu0 }
 0x1c1   : > { %988 = vmatmul.mubr.msk.bf16.vlgmr.msra.gmra.mxu1 %vm754_vm5, %v702_v5 }
 0x281   : > { %v796_v8 = vpop.f32.mrf.mxu1 }
 0x282   : > { %v797_v9 = vadd.f32 %v906_v7, %v796_v8 }
 0x283   : > { %v989_v10 = vpop.f32.mrf.mxu1 }
 0x284   : > { %803 = vst.msk [vmem:[%s276_s10] sm:$0xff] %vm802_vm6, %v797_v9 }
 0x285   : > { %v799_v11 = vpop.f32.mrf.mxu1 }
 0x287   : > { %v990_v12 = vpop.f32.mrf.mxu1 }
 0x288 PF: > { %s17_s24 = sadd.s32 1, %s1051_s24  }
 0x289   : > { %p14_p4 = scmp.ge.s32.totalorder %s17_s24, 4  }
 0x28b   :  { %16 = sbr.rel (!%p14_p4) target bundleno = 1 (0x1), region = 78 }

</bundles_post_ra>
